<compile_context>
chip_gen: v6e
topology: v6e:2x2x1
jax: 0.10.0
libtpu: 0.0.40
codegen_flags: <defaults>
</compile_context>

<pallas_src>
import jax
import jax.numpy as jnp
from jax.experimental import pallas as pl
from jax.experimental.pallas import tpu as pltpu


def _round_up(x, m):
    return ((x + m - 1) // m) * m


# ---------------------------------------------------------------------------
# Kernel 1: encoder MLPBlock + partial global_add_pool over node tiles
# ---------------------------------------------------------------------------
def encode_pool_kernel(x_ref, batch_ref, ew1_ref, eb1_ref, ew2_ref, eb2_ref,
                       partial_ref):
    i = pl.program_id(1)

    @pl.when(i == 0)
    def _():
        partial_ref[...] = jnp.zeros(partial_ref.shape, jnp.float32)

    # ---- encoder MLPBlock: Linear -> ReLU -> Dropout(identity) -> Linear ----
    x = x_ref[...]                                                   # bf16 [TN, Din_p]
    h = jnp.dot(x, ew1_ref[...], preferred_element_type=jnp.float32)
    h = jnp.maximum(h + eb1_ref[...], 0.0)
    # TODO(synk): dropout omitted (inference semantics; train-mode RNG mask not needed)
    h = jnp.dot(h.astype(jnp.bfloat16), ew2_ref[...],
                preferred_element_type=jnp.float32) + eb2_ref[...]   # f32 [TN, H_p]

    # ---- partial global_add_pool: in-kernel one-hot (bf16) matmul, f32 acc ----
    g_p = partial_ref.shape[1]
    tn = x.shape[0]
    gids = jax.lax.broadcasted_iota(jnp.int32, (g_p, tn), 0)
    onehot = (gids == batch_ref[...]).astype(jnp.bfloat16)           # exact 0/1
    contrib = jnp.dot(onehot, h.astype(jnp.bfloat16),
                      preferred_element_type=jnp.float32)            # [G_p, H_p]
    partial_ref[0] = partial_ref[0] + contrib


# ---------------------------------------------------------------------------
# Kernel 2: combine per-core partial pools + decoder MLPBlock
# ---------------------------------------------------------------------------
def combine_decode_kernel(partials_ref, dw1_ref, db1_ref, dw2_ref, db2_ref,
                          out_ref):
    pooled = jnp.sum(partials_ref[...], axis=0)                      # f32 [G_p, H_p]
    d = jnp.dot(pooled.astype(jnp.bfloat16), dw1_ref[...],
                preferred_element_type=jnp.float32)
    d = jnp.maximum(d + db1_ref[...], 0.0)
    o = jnp.dot(d.astype(jnp.bfloat16), dw2_ref[...],
                preferred_element_type=jnp.float32) + db2_ref[...]
    out_ref[...] = o.astype(out_ref.dtype)


# ---------------------------------------------------------------------------
# Wrapper
# ---------------------------------------------------------------------------
def graph_mlp_forward(x, batch, num_graphs, params, *, node_tile=256,
                      core_splits=2):
    n, din = x.shape
    hid = params["encoder"]["w1"].shape[1]
    dout = params["decoder"]["w2"].shape[1]

    din_p = _round_up(din, 16)        # only bf16 sublane multiple — NOT padded to 128
    hid_p = _round_up(hid, 128)
    dout_p = _round_up(dout, 128)
    g_p = _round_up(num_graphs, 8)

    tiles_per_split = max(1, pl.cdiv(pl.cdiv(n, node_tile), core_splits))
    n_p = core_splits * tiles_per_split * node_tile

    # Pad node features with zeros; padded nodes get batch id -1 (never matches
    # the one-hot iota) so they contribute nothing to the pooled sums.
    x_p = jnp.zeros((n_p, din_p), jnp.bfloat16).at[:n, :din].set(
        x.astype(jnp.bfloat16))
    batch_p = jnp.full((1, n_p), -1, jnp.int32).at[0, :n].set(batch.astype(jnp.int32))

    def pad_w(w, rp, cp):   # zero-padded bf16 weights (padded lanes cannot leak)
        r, c = w.shape
        return jnp.zeros((rp, cp), jnp.bfloat16).at[:r, :c].set(w.astype(jnp.bfloat16))

    def pad_b(b, cp):       # zero-padded f32 biases, shaped (1, cp)
        b = b.reshape(1, -1)
        return jnp.zeros((1, cp), jnp.float32).at[:, : b.shape[1]].set(b)

    enc, dec = params["encoder"], params["decoder"]
    ew1 = pad_w(enc["w1"], din_p, hid_p); eb1 = pad_b(enc["b1"], hid_p)
    ew2 = pad_w(enc["w2"], hid_p, hid_p); eb2 = pad_b(enc["b2"], hid_p)
    dw1 = pad_w(dec["w1"], hid_p, hid_p); db1 = pad_b(dec["b1"], hid_p)
    dw2 = pad_w(dec["w2"], hid_p, dout_p); db2 = pad_b(dec["b2"], dout_p)

    # Constant block index -> weights stay VMEM-resident across the whole grid.
    def const2(shape):
        return pl.BlockSpec(shape, lambda c, i: (0,) * len(shape))

    enc_flops = (2 * n_p * din_p * hid_p + 2 * n_p * hid_p * hid_p
                 + 2 * g_p * n_p * hid_p)
    enc_bytes = int(x_p.size * 2 + batch_p.size * 4
                    + (ew1.size + ew2.size) * 2 + (eb1.size + eb2.size) * 4
                    + core_splits * g_p * hid_p * 4)

    partials = pl.pallas_call(
        encode_pool_kernel,
        out_shape=jax.ShapeDtypeStruct((core_splits, g_p, hid_p), jnp.float32),
        grid_spec=pltpu.PrefetchScalarGridSpec(
            num_scalar_prefetch=0,
            grid=(core_splits, tiles_per_split),
            in_specs=[
                # x node tile: last block dim == full array dim (no 128-pad of din)
                pl.BlockSpec((node_tile, din_p),
                             lambda c, i: (c * tiles_per_split + i, 0)),
                pl.BlockSpec((1, node_tile),
                             lambda c, i: (0, c * tiles_per_split + i)),
                const2(ew1.shape), const2(eb1.shape),
                const2(ew2.shape), const2(eb2.shape),
            ],
            out_specs=pl.BlockSpec((1, g_p, hid_p), lambda c, i: (c, 0, 0)),
        ),
        compiler_params=pltpu.CompilerParams(
            # leading axis splits nodes across TensorCores (v7x); trailing axis
            # carries the pooled accumulator -> must be arbitrary
            dimension_semantics=("parallel", "arbitrary"),
            vmem_limit_bytes=64 * 1024 * 1024,
        ),
        cost_estimate=pl.CostEstimate(flops=int(enc_flops), transcendentals=0,
                                      bytes_accessed=enc_bytes),
    )(x_p, batch_p, ew1, eb1, ew2, eb2)

    def const1(shape):
        return pl.BlockSpec(shape, lambda i: (0,) * len(shape))

    dec_flops = 2 * g_p * hid_p * hid_p + 2 * g_p * hid_p * dout_p
    dec_bytes = int(partials.size * 4 + (dw1.size + dw2.size) * 2
                    + (db1.size + db2.size) * 4 + g_p * dout_p * 4)

    # TODO(synk): for num_graphs >> 8 with sorted batch ids, switch the pool to a
    # scalar-prefetched per-tile [min_gid, max_gid) window instead of full G_p.
    out_p = pl.pallas_call(
        combine_decode_kernel,
        out_shape=jax.ShapeDtypeStruct((g_p, dout_p), jnp.float32),
        grid_spec=pltpu.PrefetchScalarGridSpec(
            num_scalar_prefetch=0,
            grid=(1,),
            in_specs=[const1(partials.shape),
                      const1(dw1.shape), const1(db1.shape),
                      const1(dw2.shape), const1(db2.shape)],
            out_specs=pl.BlockSpec((g_p, dout_p), lambda i: (0, 0)),
        ),
        compiler_params=pltpu.CompilerParams(
            dimension_semantics=("arbitrary",),
            vmem_limit_bytes=64 * 1024 * 1024,
        ),
        cost_estimate=pl.CostEstimate(flops=int(dec_flops), transcendentals=0,
                                      bytes_accessed=dec_bytes),
    )(partials, dw1, db1, dw2, db2)

    # Rows >= num_graphs / cols >= dout are padding garbage and must be sliced.
    return out_p[:num_graphs, :dout]


# ---------------------------------------------------------------------------
# Parameter init (deterministic, synthetic, unpadded "true" shapes)
# ---------------------------------------------------------------------------
def init_params(key, input_dim, hidden_dim, output_dim):
    ks = jax.random.split(key, 8)
    scale = 0.1

    def lin(kw, kb, fan_in, fan_out):
        w = scale * jax.random.normal(kw, (fan_in, fan_out), jnp.float32)
        b = scale * jax.random.normal(kb, (1, fan_out), jnp.float32)
        return w, b

    ew1, eb1 = lin(ks[0], ks[1], input_dim, hidden_dim)
    ew2, eb2 = lin(ks[2], ks[3], hidden_dim, hidden_dim)
    dw1, db1 = lin(ks[4], ks[5], hidden_dim, hidden_dim)
    dw2, db2 = lin(ks[6], ks[7], hidden_dim, output_dim)
    return {
        "encoder": {"w1": ew1, "b1": eb1, "w2": ew2, "b2": eb2},
        "decoder": {"w1": dw1, "b1": db1, "w2": dw2, "b2": db2},
    }


# ---------------------------------------------------------------------------
# Pure-JAX reference (mirrors the kernel's bf16-operand / f32-accumulate math,
# including the bf16-rounded h entering the pooled sum)
# ---------------------------------------------------------------------------
def reference_forward(x, batch, num_graphs, params):
    def block(v, p):
        h = jnp.dot(v.astype(jnp.bfloat16), p["w1"].astype(jnp.bfloat16),
                    preferred_element_type=jnp.float32) + p["b1"]
        h = jnp.maximum(h, 0.0)
        return jnp.dot(h.astype(jnp.bfloat16), p["w2"].astype(jnp.bfloat16),
                       preferred_element_type=jnp.float32) + p["b2"]

    h = block(x, params["encoder"])
    pooled = jax.ops.segment_sum(h.astype(jnp.bfloat16).astype(jnp.float32),
                                 batch, num_segments=num_graphs)
    return block(pooled, params["decoder"])


# ---------------------------------------------------------------------------
if __name__ == "__main__":
    num_nodes = 200          # not a multiple of the node tile -> exercises padding
    input_dim = 16
    hidden_dim = 32
    output_dim = 8
    num_graphs = 8

    key = jax.random.PRNGKey(0)
    kx, kp = jax.random.split(key)

    x = jax.random.normal(kx, (num_nodes, input_dim), jnp.float32)
    batch = (jnp.arange(num_nodes, dtype=jnp.int32) * num_graphs) // num_nodes
    params = init_params(kp, input_dim, hidden_dim, output_dim)

    out = graph_mlp_forward(x, batch, num_graphs, params)
    out = jax.block_until_ready(out)

    ref = reference_forward(x, batch, num_graphs, params)
    assert out.shape == (num_graphs, output_dim)
    assert jnp.allclose(out, ref, atol=2e-2, rtol=2e-2), "mismatch vs reference"

    print("KERNEL_OK")
</pallas_src>

<mosaic_0001>
module attributes {stable_mosaic.version = 11 : i64} {
  func.func @encode_pool_kernel(%arg0: i32, %arg1: i32, %arg2: memref<256x16xbf16, #tpu.memory_space<vmem>>, %arg3: memref<1x256xi32, #tpu.memory_space<vmem>>, %arg4: memref<16x128xbf16, #tpu.memory_space<vmem>>, %arg5: memref<1x128xf32, #tpu.memory_space<vmem>>, %arg6: memref<128x128xbf16, #tpu.memory_space<vmem>>, %arg7: memref<1x128xf32, #tpu.memory_space<vmem>>, %arg8: memref<1x8x128xf32, #tpu.memory_space<vmem>>) attributes {dimension_semantics = [#tpu.dimension_semantics<parallel>, #tpu.dimension_semantics<arbitrary>], iteration_bounds = array<i64: 2, 1>, scalar_prefetch = 0 : i64, scratch_operands = 0 : i64, tpu.core_type = #tpu.core_type<tc>, window_params = [{transform_indices = @transform_0, window_bounds = array<i64: 256, 16>}, {transform_indices = @transform_1, window_bounds = array<i64: 1, 256>}, {pipeline_mode = #tpu.pipeline_mode<synchronous>, transform_indices = @transform_2, window_bounds = array<i64: 16, 128>}, {pipeline_mode = #tpu.pipeline_mode<synchronous>, transform_indices = @transform_3, window_bounds = array<i64: 1, 128>}, {pipeline_mode = #tpu.pipeline_mode<synchronous>, transform_indices = @transform_4, window_bounds = array<i64: 128, 128>}, {pipeline_mode = #tpu.pipeline_mode<synchronous>, transform_indices = @transform_5, window_bounds = array<i64: 1, 128>}, {transform_indices = @transform_6, window_bounds = array<i64: 1, 8, 128>}]} {
    %c0_i32 = arith.constant 0 : i32
    %0 = arith.cmpi eq, %arg1, %c0_i32 : i32
    %1 = arith.extui %0 : i1 to i32
    %c0_i32_0 = arith.constant 0 : i32
    %2 = arith.cmpi ne, %1, %c0_i32_0 : i32
    scf.if %2 {
      %cst_21 = arith.constant 0.000000e+00 : f32
      %32 = vector.broadcast %cst_21 : f32 to vector<1x8x128xf32>
      %c0_22 = arith.constant 0 : index
      %c0_23 = arith.constant 0 : index
      %c0_24 = arith.constant 0 : index
      %33 = vector.load %arg8[%c0_22, %c0_23, %c0_24] : memref<1x8x128xf32, #tpu.memory_space<vmem>>, vector<1x8x128xf32>
      tpu.vector_store %arg8[%c0_22, %c0_23, %c0_24], %32 {strides = array<i32>} : memref<1x8x128xf32, #tpu.memory_space<vmem>>, vector<1x8x128xf32>,
    } else {
    }
    %c0 = arith.constant 0 : index
    %c0_1 = arith.constant 0 : index
    %3 = vector.load %arg2[%c0, %c0_1] : memref<256x16xbf16, #tpu.memory_space<vmem>>, vector<256x16xbf16>
    %c0_2 = arith.constant 0 : index
    %c0_3 = arith.constant 0 : index
    %4 = vector.load %arg4[%c0_2, %c0_3] : memref<16x128xbf16, #tpu.memory_space<vmem>>, vector<16x128xbf16>
    %cst = arith.constant dense<0.000000e+00> : vector<256x128xf32>
    %5 = tpu.matmul %3, %4, %cst {dimension_numbers = #tpu.dot_dimension_numbers<[1], [0], [0], [1], [0, 0, 1, 1], [], []>} : vector<256x16xbf16>, vector<16x128xbf16>, vector<256x128xf32> -> vector<256x128xf32>
    %c0_4 = arith.constant 0 : index
    %c0_5 = arith.constant 0 : index
    %6 = vector.load %arg5[%c0_4, %c0_5] : memref<1x128xf32, #tpu.memory_space<vmem>>, vector<1x128xf32>
    %7 = vector.broadcast %6 : vector<1x128xf32> to vector<256x128xf32>
    %8 = arith.addf %5, %7 : vector<256x128xf32>
    %cst_6 = arith.constant 0.000000e+00 : f32
    %9 = vector.broadcast %cst_6 : f32 to vector<256x128xf32>
    %10 = arith.maximumf %8, %9 : vector<256x128xf32>
    %11 = arith.truncf %10 : vector<256x128xf32> to vector<256x128xbf16>
    %c0_7 = arith.constant 0 : index
    %c0_8 = arith.constant 0 : index
    %12 = vector.load %arg6[%c0_7, %c0_8] : memref<128x128xbf16, #tpu.memory_space<vmem>>, vector<128x128xbf16>
    %cst_9 = arith.constant dense<0.000000e+00> : vector<256x128xf32>
    %13 = tpu.matmul %11, %12, %cst_9 {dimension_numbers = #tpu.dot_dimension_numbers<[1], [0], [0], [1], [0, 0, 1, 1], [], []>} : vector<256x128xbf16>, vector<128x128xbf16>, vector<256x128xf32> -> vector<256x128xf32>
    %c0_10 = arith.constant 0 : index
    %c0_11 = arith.constant 0 : index
    %14 = vector.load %arg7[%c0_10, %c0_11] : memref<1x128xf32, #tpu.memory_space<vmem>>, vector<1x128xf32>
    %15 = vector.broadcast %14 : vector<1x128xf32> to vector<256x128xf32>
    %16 = arith.addf %13, %15 : vector<256x128xf32>
    %17 = tpu.iota {dimensions = array<i32: 0>} : vector<8x256xi32>
    %c0_12 = arith.constant 0 : index
    %c0_13 = arith.constant 0 : index
    %18 = vector.load %arg3[%c0_12, %c0_13] : memref<1x256xi32, #tpu.memory_space<vmem>>, vector<1x256xi32>
    %19 = vector.broadcast %18 : vector<1x256xi32> to vector<8x256xi32>
    %20 = arith.cmpi eq, %17, %19 : vector<8x256xi32>
    %21 = arith.extui %20 : vector<8x256xi1> to vector<8x256xi32>
    %22 = arith.sitofp %21 : vector<8x256xi32> to vector<8x256xf32>
    %23 = arith.truncf %22 : vector<8x256xf32> to vector<8x256xbf16>
    %24 = arith.truncf %16 : vector<256x128xf32> to vector<256x128xbf16>
    %cst_14 = arith.constant dense<0.000000e+00> : vector<8x128xf32>
    %25 = tpu.matmul %23, %24, %cst_14 {dimension_numbers = #tpu.dot_dimension_numbers<[1], [0], [0], [1], [0, 0, 1, 1], [], []>} : vector<8x256xbf16>, vector<256x128xbf16>, vector<8x128xf32> -> vector<8x128xf32>
    %c0_15 = arith.constant 0 : index
    %c0_16 = arith.constant 0 : index
    %c0_17 = arith.constant 0 : index
    %26 = vector.load %arg8[%c0_15, %c0_16, %c0_17] : memref<1x8x128xf32, #tpu.memory_space<vmem>>, vector<1x8x128xf32>
    %27 = vector.shape_cast %26 : vector<1x8x128xf32> to vector<8x128xf32>
    %28 = arith.addf %27, %25 : vector<8x128xf32>
    %c0_18 = arith.constant 0 : index
    %c0_19 = arith.constant 0 : index
    %c0_20 = arith.constant 0 : index
    %29 = vector.load %arg8[%c0_18, %c0_19, %c0_20] : memref<1x8x128xf32, #tpu.memory_space<vmem>>, vector<1x8x128xf32>
    %30 = vector.shape_cast %29 : vector<1x8x128xf32> to vector<8x128xf32>
    %31 = vector.shape_cast %28 : vector<8x128xf32> to vector<1x8x128xf32>
    tpu.vector_store %arg8[%c0_18, %c0_19, %c0_20], %31 {strides = array<i32>} : memref<1x8x128xf32, #tpu.memory_space<vmem>>, vector<1x8x128xf32>,
    return
  }
  func.func @transform_0(%arg0: i32, %arg1: i32) -> (i32, i32) {
    %c1_i32 = arith.constant 1 : i32
    %0 = arith.muli %arg0, %c1_i32 : i32
    %1 = arith.addi %0, %arg1 : i32
    %c0_i32 = arith.constant 0 : i32
    %c0_i32_0 = arith.constant 0 : i32
    return %1, %c0_i32 : i32, i32
  }
  func.func @transform_1(%arg0: i32, %arg1: i32) -> (i32, i32) {
    %c1_i32 = arith.constant 1 : i32
    %0 = arith.muli %arg0, %c1_i32 : i32
    %1 = arith.addi %0, %arg1 : i32
    %c0_i32 = arith.constant 0 : i32
    %c0_i32_0 = arith.constant 0 : i32
    return %c0_i32, %1 : i32, i32
  }
  func.func @transform_2(%arg0: i32, %arg1: i32) -> (i32, i32) {
    %c0_i32 = arith.constant 0 : i32
    %c0_i32_0 = arith.constant 0 : i32
    %c0_i32_1 = arith.constant 0 : i32
    return %c0_i32, %c0_i32_0 : i32, i32
  }
  func.func @transform_3(%arg0: i32, %arg1: i32) -> (i32, i32) {
    %c0_i32 = arith.constant 0 : i32
    %c0_i32_0 = arith.constant 0 : i32
    %c0_i32_1 = arith.constant 0 : i32
    return %c0_i32, %c0_i32_0 : i32, i32
  }
  func.func @transform_4(%arg0: i32, %arg1: i32) -> (i32, i32) {
    %c0_i32 = arith.constant 0 : i32
    %c0_i32_0 = arith.constant 0 : i32
    %c0_i32_1 = arith.constant 0 : i32
    return %c0_i32, %c0_i32_0 : i32, i32
  }
  func.func @transform_5(%arg0: i32, %arg1: i32) -> (i32, i32) {
    %c0_i32 = arith.constant 0 : i32
    %c0_i32_0 = arith.constant 0 : i32
    %c0_i32_1 = arith.constant 0 : i32
    return %c0_i32, %c0_i32_0 : i32, i32
  }
  func.func @transform_6(%arg0: i32, %arg1: i32) -> (i32, i32, i32) {
    %c0_i32 = arith.constant 0 : i32
    %c0_i32_0 = arith.constant 0 : i32
    %c0_i32_1 = arith.constant 0 : i32
    return %arg0, %c0_i32, %c0_i32_0 : i32, i32, i32
  }
}

</mosaic_0001>

<bundles_post_ra>
// kernel: tpu_custom_call.1
= control target key start
LH: loop header
LB: loop body
LE: loop exit
PB: predicated region body
PF: predicated region fallthrough
CT: control target
= control target key end

     0   :  { %11 = vsyncpa [#allocation3], 0  ;;  %s1786_s0 = inlined_call_operand.vmem [shape: bf16[512,16], index: 0, kind: input, shape index: {}]   ;;  %s1787_s1 = inlined_call_operand.vmem [shape: s32[1,512], index: 1, kind: input, shape index: {}]   ;;  %s1788_s2 = inlined_call_operand.vmem [shape: bf16[16,128], index: 2, kind: input, shape index: {}]   ;;  %s1789_s3 = inlined_call_operand.vmem [shape: f32[1,128], index: 3, kind: input, shape index: {}]   ;;  %s1790_s4 = inlined_call_operand.vmem [shape: bf16[128,128], index: 4, kind: input, shape index: {}]   ;;  %s1791_s5 = inlined_call_operand.vmem [shape: f32[1,128], index: 5, kind: input, shape index: {}]   ;;  %s1792_s6 = inlined_call_operand.hbm [shape: f32[2,8,128], index: 6, kind: output, shape index: {}]  }
   0x1   :  { %13 = vsyncpa [#allocation3 + $0x1], 0  ;;  %s1492_s21 = smov 0   ;;  %s1494_s22 = smov 0  }
   0x2   :  { %s1496_s23 = smov 0   ;;  %s1498_s24 = smov 0  }
   0x3   :  { %s1500_s25 = smov 0   ;;  %s1502_s26 = smov 0  }
   0x4 LB: > { %s1088_s27 = sadd.s32 4294967295, %s1453_s26   ;;  %s1089_s28 = sadd.s32 4294967294, %s1453_s26   ;;  %s1453_s26 = sphi %s1502_s26, %s19_s26   ;;  %s1449_s25 = sphi %s1500_s25, %s1799_s25   ;;  %s1445_s24 = sphi %s1498_s24, %s1798_s24   ;;  %s1441_s23 = sphi %s1496_s23, %s1797_s23   ;;  %s1437_s22 = sphi %s1494_s22, %s1796_s22   ;;  %s1433_s21 = sphi %s1492_s21, %s1795_s21  }
   0x5   : > { %s31_s29 = sadd.s32 1, %s1449_s25  ;;  %s178_s30 = sadd.s32 1, %s1441_s23 }
   0x6   : > { %p33_p0 = scmp.ge.s32.totalorder %s31_s29, 2  ;;  %p188_p1 = scmp.ne.s32.totalorder %s1441_s23, %s1437_s22 }
   0x7   : > { %p189_p2 = scmp.eq.s32.totalorder %s1088_s27, 1  ;;  %p194_p3 = scmp.ne.s32.totalorder %s1437_s22, %s1433_s21 }
   0x8   : > { %s1801_s29 = smov (%p33_p0, %s31_s29), 0  ;;  %p195_p5 = scmp.eq.s32.totalorder %s1089_s28, 1 }
   0x9   : > { %p1532_p4 = por %p189_p2, %p188_p1  ;;  %s175_s8 = ssub.s32 %s1449_s25, %s1801_s29 }
   0xa   : > { %p1092_p6 = scmp.ge.s32.totalorder %s1453_s26, 1  ;;  %p176_p7 = scmp.eq.s32.totalorder %s175_s8, 0 }
   0xb   : > { %p1539_p8 = por %p195_p5, %p194_p3  ;;  %p246_p9 = scmp.lt.s32.totalorder %s1453_s26, 3 }
   0xc   : > { %s1545_s10 = scalar_select %p176_p7, %s1441_s23, %s178_s30  }
   0xd   : > { %p247_p10 = pnand %p1092_p6, %p246_p9 }
   0xe   : > { %s1094_s13 = sshll.u32 (!%p247_p10), %s1445_s24, 5  ;;  %s1096_s28 = sshll.u32 (!%p247_p10), %s1445_s24, 1 }
   0xf   : > { %250 = sbr.rel (%p247_p10) target bundleno = 731 (0x2db), region = 44  ;;  %p284_p11 = scmp.lt.s32.totalorder (!%p247_p10), %s1094_s13, 63 }
  0x10   : > { %p292_p12 = scmp.lt.s32.totalorder (!%p247_p10), %s1096_s28, 3  ;;  %s279_s14 = sand.u32 (!%p247_p10), 1, %s1437_s22  }
  0x11   : > { %s1093_s15 = sshll.u32 (!%p247_p10), %s279_s14, 3  ;;  %s1147_s16 = sshll.u32 (!%p247_p10), %s1445_s24, 7 }
  0x12   : > { %s281_s17 = scalar_lea.vmem (!%p247_p10), [#allocation2], %s1093_s15  ;;  %s1456_s8 = smov (!%p247_p10), [#allocation2]  }
  0x13   : > { %s1381_s24 = sshll.u32 (!%p247_p10), %s1456_s8, 4  ;;  %s1382_s24 = int_to_ptr.vmem [resolvable:$false] %s1381_s24 }
  0x14   : > { %v1352_v0 = vld [vmem:[%s1788_s2] sm:$0xff]   ;;  %v1369_v1 = vld [vmem:[%s1790_s4 + $0x38] sm:$0xff]   ;;  %s1803_s13 = smov (!%p284_p11, %s1094_s13), 63  ;;  %v1370_v2 = vld [vmem:[%s1790_s4 + $0x30] sm:$0xff]   ;;  %vm430_vm0 = vcmask 130048   ;;  %s1805_s28 = smov (!%p292_p12, %s1096_s28), 3 }
  0x15   : > { %1213 = vmatprep.subr.bf16.mxu0 %v1352_v0  ;;  %1247 = vmatprep.subr.bf16.mxu1 %v1369_v1  ;;  %s1095_s18 = sshll.u32 %s1803_s13, 2  ;;  %v1371_v3 = vld [vmem:[%s1790_s4 + $0x28] sm:$0xff]   ;;  %v1372_v7 = vld [vmem:[%s1790_s4 + $0x20] sm:$0xff]   ;;  %v1373_v8 = vld [vmem:[%s1790_s4 + $0x18] sm:$0xff]   ;;  %s294_s11 = scalar_lea.vmem %s1787_s1, %s1805_s28 }
  0x16   : > { %1214 = vmatpush3.bf16.msra.mxu0 %v1352_v0  ;;  %1248 = vmatpush3.bf16.msra.mxu1 %v1369_v1  ;;  %s1560_s27 = scalar_lea.vmem %s1786_s0, %s1095_s18  ;;  %v1374_v22 = vld [vmem:[%s1790_s4 + $0x10] sm:$0xff]   ;;  %v1375_v23 = vld [vmem:[%s1790_s4 + $0x8] sm:$0xff]   ;;  %v1376_v24 = vld [vmem:[%s1790_s4] sm:$0xff]   ;;  %s1012_s18 = sshll.u32 %s281_s17, 4  ;;  %s1013_s18 = int_to_ptr.vmem [resolvable:$true] %s1012_s18 }
  0x17   : > { %1249 = vmatprep.subr.bf16.mxu1 %v1370_v2  ;;  %v1353_v4 = vld [vmem:[%s1560_s27] sm:$0xff]   ;;  %v1354_v5 = vld [vmem:[%s1560_s27 + $0x8] sm:$0xff]   ;;  %v1355_v6 = vld [vmem:[%s1560_s27 + $0x10] sm:$0xff]   ;;  %s999_s28 = scalar_lea.sflag [#allocation3], %s279_s14  ;;  %s1377_s30 = scalar_lea.vmem %s1013_s18, 128 }
  0x18   : > { %1215 = vmatprep.mubr.msk.bf16.mxu0 %vm430_vm0, %v1353_v4  ;;  %v1356_v9 = vld [vmem:[%s1560_s27 + $0x18] sm:$0xff]   ;;  %v1357_v10 = vld [vmem:[%s1560_s27 + $0x20] sm:$0xff]   ;;  %v1358_v11 = vld [vmem:[%s1560_s27 + $0x28] sm:$0xff]   ;;  %p1378_p13 = scmp.ne.s32.totalorder %s1013_s18, %s1377_s30  ;;  %p1384_p2 = scmp.lt.s32.totalorder %s1013_s18, %s1382_s24 }
  0x19   : > { %1216 = vmatmul.mubr.msk.bf16.vlgmr.msra.gmra.mxu0 %vm430_vm0, %v1354_v5  ;;  %v1359_v12 = vld [vmem:[%s1560_s27 + $0x30] sm:$0xff]   ;;  %v1360_v13 = vld [vmem:[%s1560_s27 + $0x38] sm:$0xff]   ;;  %v1361_v14 = vld [vmem:[%s1560_s27 + $0x40] sm:$0xff]  }
  0x1a   : > { %1250 = vmatpush3.bf16.msra.mxu1 %v1370_v2  ;;  %1219 = vmatprep.mubr.msk.bf16.mxu0 %vm430_vm0, %v1355_v6  ;;  %v1362_v15 = vld [vmem:[%s1560_s27 + $0x48] sm:$0xff]   ;;  %v1363_v16 = vld [vmem:[%s1560_s27 + $0x50] sm:$0xff]   ;;  %v1364_v17 = vld [vmem:[%s1560_s27 + $0x58] sm:$0xff]   ;;  %p1379_p0 = pnand %p1378_p13, %p1532_p4 }
  0x1b   : > { %1251 = vmatprep.subr.bf16.mxu1 %v1371_v3  ;;  %v1365_v18 = vld [vmem:[%s1560_s27 + $0x60] sm:$0xff]   ;;  %v1366_v19 = vld [vmem:[%s1560_s27 + $0x68] sm:$0xff]   ;;  %v1367_v20 = vld [vmem:[%s1560_s27 + $0x70] sm:$0xff]  }
  0x1c   : > { %v1368_v21 = vld [vmem:[%s1560_s27 + $0x78] sm:$0xff]   ;;  %v1615_v27 = vld [vmem:[%s1789_s3] ss:$0 sm:$0xff]  ;;  %s1746_s27 = scalar_lea.hbm %s1792_s6, %s1147_s16  ;;  %p1380_p1 = pneg %p1379_p0 }
  0x1e   : > { %1252 = vmatpush3.bf16.msra.mxu1 %v1371_v3 }
  0x1f   : > { %1253 = vmatprep.subr.bf16.mxu1 %v1372_v7 }
  0x21   : > { %1220 = vmatmul.mubr.msk.bf16.gmra.mxu0 %vm430_vm0, %v1356_v9 }
  0x22   : > { %1254 = vmatpush3.bf16.msra.mxu1 %v1372_v7  ;;  %1223 = vmatprep.mubr.msk.bf16.mxu0 %vm430_vm0, %v1357_v10 }
  0x23   : > { %1255 = vmatprep.subr.bf16.mxu1 %v1373_v8 }
  0x26   : > { %1256 = vmatpush3.bf16.msra.mxu1 %v1373_v8 }
  0x27   : > { %1257 = vmatprep.subr.bf16.mxu1 %v1374_v22 }
  0x29   : > { %1224 = vmatmul.mubr.msk.bf16.gmra.mxu0 %vm430_vm0, %v1358_v11 }
  0x2a   : > { %1227 = vmatprep.mubr.msk.bf16.mxu0 %vm430_vm0, %v1359_v12  ;;  %1258 = vmatpush3.bf16.msra.mxu1 %v1374_v22 }
  0x2b   : > { %1259 = vmatprep.subr.bf16.mxu1 %v1375_v23 }
  0x2e   : > { %1260 = vmatpush3.bf16.msra.mxu1 %v1375_v23 }
  0x2f   : > { %1261 = vmatprep.subr.bf16.mxu1 %v1376_v24 }
  0x31   : > { %1228 = vmatmul.mubr.msk.bf16.gmra.mxu0 %vm430_vm0, %v1360_v13 }
  0x32   : > { %1231 = vmatprep.mubr.msk.bf16.mxu0 %vm430_vm0, %v1361_v14  ;;  %1262 = vmatpush3.bf16.msra.mxu1 %v1376_v24 }
  0x39   : > { %1232 = vmatmul.mubr.msk.bf16.gmra.mxu0 %vm430_vm0, %v1362_v15 }
  0x3a   : > { %1235 = vmatprep.mubr.msk.bf16.mxu0 %vm430_vm0, %v1363_v16 }
  0x41   : > { %1236 = vmatmul.mubr.msk.bf16.gmra.mxu0 %vm430_vm0, %v1364_v17 }
  0x42   : > { %1239 = vmatprep.mubr.msk.bf16.mxu0 %vm430_vm0, %v1365_v18 }
  0x49   : > { %1240 = vmatmul.mubr.msk.bf16.gmra.mxu0 %vm430_vm0, %v1366_v19 }
  0x4a   : > { %1243 = vmatprep.mubr.msk.bf16.mxu0 %vm430_vm0, %v1367_v20 }
  0x51   : > { %1244 = vmatmul.mubr.msk.bf16.gmra.mxu0 %vm430_vm0, %v1368_v21 }
  0xd9   : > { %v1217_v25 = vpop.f32.mrf.mxu0 }
  0xda   : > { %v522_v31 = vadd.f32 %v1217_v25, %v1615_v27 }
  0xdb   : > { %v513_v26 = vpop.f32.mrf.mxu0 }
  0xdc   : > { %v514_v29 = vadd.f32 %v1615_v27, %v513_v26  ;;  %v642_v38 = vmax.f32 %v522_v31, 0.0 }
  0xdd   : > { %v1218_v28 = vpop.f32.mrf.mxu0 }
  0xde   : > { %v525_v30 = vadd.f32 %v1218_v28, %v1615_v27  ;;  %v640_v36 = vmax.f32 %v514_v29, 0.0 }
  0xdf   : > { %v516_v32 = vpop.f32.mrf.mxu0 }
  0xe0   : > { %v517_v33 = vadd.f32 %v1615_v27, %v516_v32  ;;  %v643_v34 = vmax.f32 %v525_v30, 0.0 }
  0xe1   : > { %v1221_v35 = vpop.f32.mrf.mxu0 }
  0xe2   : > { %v641_v37 = vmax.f32 %v517_v33, 0.0  ;;  %v673_v41 = vpack.c.bf16 %v643_v34, %v642_v38  ;;  %v538_v45 = vadd.f32 %v1221_v35, %v1615_v27 }
  0xe3   : > { %v529_v39 = vpop.f32.mrf.mxu0 }
  0xe4   : > { %v672_v40 = vpack.c.bf16 %v641_v37, %v640_v36  ;;  %v530_v43 = vadd.f32 %v1615_v27, %v529_v39  ;;  %v646_v52 = vmax.f32 %v538_v45, 0.0 }
  0xe5   : > { %v1222_v42 = vpop.f32.mrf.mxu0 }
  0xe6   : > { %v541_v44 = vadd.f32 %v1222_v42, %v1615_v27  ;;  %1263 = vmatprep.mubr.bf16.mxu1 %v672_v40  ;;  %v644_v50 = vmax.f32 %v530_v43, 0.0 }
  0xe7   : > { %v532_v46 = vpop.f32.mrf.mxu0  ;;  %1264 = vmatmul.mubr.bf16.vlgmr.msra.gmra.mxu1 %v673_v41 }
  0xe8   : > { %v533_v47 = vadd.f32 %v1615_v27, %v532_v46  ;;  %v647_v48 = vmax.f32 %v541_v44, 0.0 }
  0xe9   : > { %v1225_v49 = vpop.f32.mrf.mxu0 }
  0xea   : > { %v645_v51 = vmax.f32 %v533_v47, 0.0  ;;  %v675_v55 = vpack.c.bf16 %v647_v48, %v646_v52  ;;  %v554_v59 = vadd.f32 %v1225_v49, %v1615_v27 }
  0xeb   : > { %v545_v53 = vpop.f32.mrf.mxu0 }
  0xec   : > { %v674_v54 = vpack.c.bf16 %v645_v51, %v644_v50  ;;  %v546_v57 = vadd.f32 %v1615_v27, %v545_v53  ;;  %v650_v2 = vmax.f32 %v554_v59, 0.0 }
  0xed   : > { %v1226_v56 = vpop.f32.mrf.mxu0 }
  0xee   : > { %v557_v58 = vadd.f32 %v1226_v56, %v1615_v27  ;;  %1267 = vmatprep.mubr.bf16.mxu1 %v674_v54  ;;  %v648_v0 = vmax.f32 %v546_v57, 0.0 }
  0xef   : > { %v548_v60 = vpop.f32.mrf.mxu0  ;;  %1268 = vmatmul.mubr.bf16.gmra.mxu1 %v675_v55 }
  0xf0   : > { %v549_v61 = vadd.f32 %v1615_v27, %v548_v60  ;;  %v651_v62 = vmax.f32 %v557_v58, 0.0 }
  0xf1   : > { %v1229_v63 = vpop.f32.mrf.mxu0 }
  0xf2   : > { %v649_v1 = vmax.f32 %v549_v61, 0.0  ;;  %v677_v5 = vpack.c.bf16 %v651_v62, %v650_v2  ;;  %v570_v9 = vadd.f32 %v1229_v63, %v1615_v27 }
  0xf3   : > { %v561_v3 = vpop.f32.mrf.mxu0 }
  0xf4   : > { %v676_v4 = vpack.c.bf16 %v649_v1, %v648_v0  ;;  %v562_v7 = vadd.f32 %v1615_v27, %v561_v3  ;;  %v654_v16 = vmax.f32 %v570_v9, 0.0 }
  0xf5   : > { %v1230_v6 = vpop.f32.mrf.mxu0 }
  0xf6   : > { %v573_v8 = vadd.f32 %v1230_v6, %v1615_v27  ;;  %1271 = vmatprep.mubr.bf16.mxu1 %v676_v4  ;;  %v652_v14 = vmax.f32 %v562_v7, 0.0 }
  0xf7   : > { %v564_v10 = vpop.f32.mrf.mxu0  ;;  %1272 = vmatmul.mubr.bf16.gmra.mxu1 %v677_v5 }
  0xf8   : > { %v565_v11 = vadd.f32 %v1615_v27, %v564_v10  ;;  %v655_v12 = vmax.f32 %v573_v8, 0.0 }
  0xf9   : > { %v1233_v13 = vpop.f32.mrf.mxu0 }
  0xfa   : > { %v653_v15 = vmax.f32 %v565_v11, 0.0  ;;  %v679_v19 = vpack.c.bf16 %v655_v12, %v654_v16  ;;  %v586_v23 = vadd.f32 %v1233_v13, %v1615_v27  ;;  %v920_v11 = vlaneseq  ;;  %v922_v13 = vld [vmem:[%s294_s11] sm:$0x3]  ;;  %s1383_s11 = scalar_lea.vmem %s1382_s24, 256 }
  0xfb   : > { %v577_v17 = vpop.f32.mrf.mxu0  ;;  %p1385_p3 = scmp.lt.s32.totalorder %s1383_s11, %s1377_s30 }
  0xfc   : > { %v678_v18 = vpack.c.bf16 %v653_v15, %v652_v14  ;;  %v578_v21 = vadd.f32 %v1615_v27, %v577_v17  ;;  %v658_v31 = vmax.f32 %v586_v23, 0.0  ;;  %v1650_v12 = vshrl.u32 %v920_v11, 7 }
  0xfd   : > { %v1234_v20 = vpop.f32.mrf.mxu0  ;;  %v1455_v17 = vmov 1.0|1.0   ;;  %p1386_p5 = por %p1385_p3, %p1384_p2 }
  0xfe   : > { %v589_v22 = vadd.f32 %v1234_v20, %v1615_v27  ;;  %1275 = vmatprep.mubr.bf16.mxu1 %v678_v18  ;;  %v656_v29 = vmax.f32 %v578_v21, 0.0  ;;  %v925_v14 = vsub.s32 0, %v1650_v12 }
  0xff   : > { %v580_v24 = vpop.f32.mrf.mxu0  ;;  %1276 = vmatmul.mubr.bf16.gmra.mxu1 %v679_v19  ;;  %v1666_v19 = vld [vmem:[%s1791_s5] ss:$0 sm:$0xff]  ;;  %p1387_p6 = pnand %p1386_p5, %p1380_p1 }
 0x100   : > { %v581_v25 = vadd.f32 %v1615_v27, %v580_v24  ;;  %v659_v26 = vmax.f32 %v589_v22, 0.0  ;;  %v1657_v16 = vrot.slane %v922_v13, %v925_v14 }
 0x101   : > { %v1237_v28 = vpop.f32.mrf.mxu0 }
 0x102   : > { %v657_v30 = vmax.f32 %v581_v25, 0.0  ;;  %v681_v34 = vpack.c.bf16 %v659_v26, %v658_v31  ;;  %v602_v38 = vadd.f32 %v1237_v28, %v1615_v27  ;;  %vm931_vm3 = vcmp.eq.s32.totalorder %v1650_v12, %v1657_v16 }
 0x103   : > { %v593_v32 = vpop.f32.mrf.mxu0  ;;  %vm1144_vm4 = vmpackc.low %vm931_vm3, %vm931_vm3 }
 0x104   : > { %v680_v33 = vpack.c.bf16 %v657_v30, %v656_v29  ;;  %v594_v36 = vadd.f32 %v1615_v27, %v593_v32  ;;  %v662_v45 = vmax.f32 %v602_v38, 0.0 }
 0x105   : > { %v1238_v35 = vpop.f32.mrf.mxu0 }
 0x106   : > { %v605_v37 = vadd.f32 %v1238_v35, %v1615_v27  ;;  %1279 = vmatprep.mubr.bf16.mxu1 %v680_v33  ;;  %v660_v43 = vmax.f32 %v594_v36, 0.0 }
 0x107   : > { %v596_v39 = vpop.f32.mrf.mxu0  ;;  %1280 = vmatmul.mubr.bf16.gmra.mxu1 %v681_v34 }
 0x108   : > { %v597_v40 = vadd.f32 %v1615_v27, %v596_v39  ;;  %v663_v41 = vmax.f32 %v605_v37, 0.0 }
 0x109   : > { %v1241_v42 = vpop.f32.mrf.mxu0 }
 0x10a   : > { %v661_v44 = vmax.f32 %v597_v40, 0.0  ;;  %v683_v48 = vpack.c.bf16 %v663_v41, %v662_v45  ;;  %v618_v52 = vadd.f32 %v1241_v42, %v1615_v27 }
 0x10b   : > { %v609_v46 = vpop.f32.mrf.mxu0 }
 0x10c   : > { %v682_v47 = vpack.c.bf16 %v661_v44, %v660_v43  ;;  %v610_v50 = vadd.f32 %v1615_v27, %v609_v46  ;;  %v666_v59 = vmax.f32 %v618_v52, 0.0 }
 0x10d   : > { %v1242_v49 = vpop.f32.mrf.mxu0 }
 0x10e   : > { %v621_v51 = vadd.f32 %v1242_v49, %v1615_v27  ;;  %1283 = vmatprep.mubr.bf16.mxu1 %v682_v47  ;;  %v664_v57 = vmax.f32 %v610_v50, 0.0 }
 0x10f   : > { %v612_v53 = vpop.f32.mrf.mxu0  ;;  %1284 = vmatmul.mubr.bf16.gmra.mxu1 %v683_v48 }
 0x110   : > { %v613_v54 = vadd.f32 %v1615_v27, %v612_v53  ;;  %v667_v55 = vmax.f32 %v621_v51, 0.0 }
 0x111   : > { %v1245_v56 = vpop.f32.mrf.mxu0 }
 0x112   : > { %v665_v58 = vmax.f32 %v613_v54, 0.0  ;;  %v685_v62 = vpack.c.bf16 %v667_v55, %v666_v59  ;;  %v634_v2 = vadd.f32 %v1245_v56, %v1615_v27 }
 0x113   : > { %v625_v60 = vpop.f32.mrf.mxu0 }
 0x114   : > { %v684_v61 = vpack.c.bf16 %v665_v58, %v664_v57  ;;  %v626_v0 = vadd.f32 %v1615_v27, %v625_v60  ;;  %v670_v8 = vmax.f32 %v634_v2, 0.0 }
 0x115   : > { %v1246_v63 = vpop.f32.mrf.mxu0 }
 0x116   : > { %v637_v1 = vadd.f32 %v1246_v63, %v1615_v27  ;;  %1287 = vmatprep.mubr.bf16.mxu1 %v684_v61  ;;  %v668_v6 = vmax.f32 %v626_v0, 0.0 }
 0x117   : > { %v628_v3 = vpop.f32.mrf.mxu0  ;;  %1288 = vmatmul.mubr.bf16.gmra.mxu1 %v685_v62 }
 0x118   : > { %v629_v4 = vadd.f32 %v1615_v27, %v628_v3  ;;  %v671_v5 = vmax.f32 %v637_v1, 0.0  ;;  %v929_v27 = vsub.s32 1, %v1650_v12 }
 0x11a   : > { %v669_v7 = vmax.f32 %v629_v4, 0.0  ;;  %v687_v10 = vpack.c.bf16 %v671_v5, %v670_v8  ;;  %v930_v15 = vrot.slane %v922_v13, %v929_v27 }
 0x11c   : > { %v686_v9 = vpack.c.bf16 %v669_v7, %v668_v6  ;;  %vm932_vm1 = vcmp.eq.s32.totalorder %v1650_v12, %v930_v15 }
 0x11d   : > { %vm1142_vm2 = vmpackc.low %vm932_vm1, %vm932_vm1 }
 0x11e   : > { %1291 = vmatprep.mubr.bf16.mxu1 %v686_v9  ;;  %1143 = vmatprep.mubr.msk.bf16.mxu0 %vm1142_vm2, %v1455_v17 }
 0x11f   : > { %1292 = vmatmul.mubr.bf16.gmra.mxu1 %v687_v10 }
 0x1a7   : > { %v1265_v18 = vpop.f32.mrf.mxu1 }
 0x1a8   : > { %v1669_v22 = vadd.f32 %v1265_v18, %v1666_v19 }
 0x1a9   : > { %v793_v20 = vpop.f32.mrf.mxu1 }
 0x1aa   : > { %v1675_v25 = vadd.f32 %v1666_v19, %v793_v20 }
 0x1ab   : > { %v1266_v21 = vpop.f32.mrf.mxu1 }
 0x1ac   : > { %v1672_v23 = vadd.f32 %v1266_v21, %v1666_v19 }
 0x1ad   : > { %v796_v24 = vpop.f32.mrf.mxu1 }
 0x1ae   : > { %v940_v26 = vpack.c.bf16 %v1672_v23, %v1669_v22  ;;  %v1680_v28 = vadd.f32 %v1666_v19, %v796_v24 }
 0x1af   : > { %v1269_v29 = vpop.f32.mrf.mxu1 }
 0x1b0   : > { %v939_v30 = vpack.c.bf16 %v1680_v28, %v1675_v25  ;;  %v1685_v33 = vadd.f32 %v1269_v29, %v1666_v19 }
 0x1b1   : > { %v809_v31 = vpop.f32.mrf.mxu1 }
 0x1b2   : > { %v1691_v36 = vadd.f32 %v1666_v19, %v809_v31 }
 0x1b3   : > { %v1270_v32 = vpop.f32.mrf.mxu1 }
 0x1b4   : > { %v1688_v34 = vadd.f32 %v1270_v32, %v1666_v19 }
 0x1b5   : > { %v812_v35 = vpop.f32.mrf.mxu1 }
 0x1b6   : > { %v942_v37 = vpack.c.bf16 %v1688_v34, %v1685_v33  ;;  %v1696_v38 = vadd.f32 %v1666_v19, %v812_v35 }
 0x1b7   : > { %v1273_v39 = vpop.f32.mrf.mxu1 }
 0x1b8   : > { %v941_v40 = vpack.c.bf16 %v1696_v38, %v1691_v36  ;;  %v834_v20 = vadd.f32 %v1273_v39, %v1666_v19 }
 0x1b9   : > { %v825_v41 = vpop.f32.mrf.mxu1 }
 0x1ba   : > { %v826_v35 = vadd.f32 %v1666_v19, %v825_v41 }
 0x1bb   : > { %v1274_v42 = vpop.f32.mrf.mxu1 }
 0x1bc   : > { %v837_v13 = vadd.f32 %v1274_v42, %v1666_v19 }
 0x1bd   : > { %v828_v43 = vpop.f32.mrf.mxu1 }
 0x1be   : > { %v944_v24 = vpack.c.bf16 %v837_v13, %v834_v20  ;;  %v829_v29 = vadd.f32 %v1666_v19, %v828_v43 }
 0x1bf   : > { %v1277_v44 = vpop.f32.mrf.mxu1 }
 0x1c0   : > { %v850_v2 = vadd.f32 %v1277_v44, %v1666_v19  ;;  %v943_v44 = vpack.c.bf16 %v829_v29, %v826_v35 }
 0x1c1   : > { %v841_v45 = vpop.f32.mrf.mxu1 }
 0x1c2   : > { %v842_v11 = vadd.f32 %v1666_v19, %v841_v45 }
 0x1c3   : > { %v1278_v46 = vpop.f32.mrf.mxu1 }
 0x1c4   : > { %v853_v62 = vadd.f32 %v1278_v46, %v1666_v19 }
 0x1c5   : > { %v844_v47 = vpop.f32.mrf.mxu1 }
 0x1c6   : > { %v946_v7 = vpack.c.bf16 %v853_v62, %v850_v2  ;;  %v845_v8 = vadd.f32 %v1666_v19, %v844_v47 }
 0x1c7   : > { %v1281_v48 = vpop.f32.mrf.mxu1 }
 0x1c8   : > { %v945_v14 = vpack.c.bf16 %v845_v8, %v842_v11  ;;  %v866_v41 = vadd.f32 %v1281_v48, %v1666_v19 }
 0x1c9   : > { %v857_v49 = vpop.f32.mrf.mxu1 }
 0x1cb   : > { %v1282_v50 = vpop.f32.mrf.mxu1 }
 0x1cc   : > { %v869_v47 = vadd.f32 %v1282_v50, %v1666_v19 }
 0x1cd   : > { %v860_v51 = vpop.f32.mrf.mxu1 }
 0x1cf   : > { %v1285_v52 = vpop.f32.mrf.mxu1 }
 0x1d0   : > { %v882_v42 = vadd.f32 %v1285_v52, %v1666_v19  ;;  %v948_v52 = vpack.c.bf16 %v869_v47, %v866_v41 }
 0x1d1   : > { %v873_v53 = vpop.f32.mrf.mxu1 }
 0x1d2   : > { %v874_v46 = vadd.f32 %v1666_v19, %v873_v53  ;;  %v858_v53 = vadd.f32 %v1666_v19, %v857_v49 }
 0x1d3   : > { %v1286_v54 = vpop.f32.mrf.mxu1 }
 0x1d4   : > { %v885_v31 = vadd.f32 %v1286_v54, %v1666_v19  ;;  %v861_v54 = vadd.f32 %v1666_v19, %v860_v51 }
 0x1d5   : > { %v876_v55 = vpop.f32.mrf.mxu1 }
 0x1d6   : > { %v950_v45 = vpack.c.bf16 %v885_v31, %v882_v42  ;;  %v877_v39 = vadd.f32 %v1666_v19, %v876_v55  ;;  %v947_v50 = vpack.c.bf16 %v861_v54, %v858_v53 }
 0x1d7   : > { %v1289_v56 = vpop.f32.mrf.mxu1 }
 0x1d8   : > { %v898_v27 = vadd.f32 %v1289_v56, %v1666_v19  ;;  %v949_v43 = vpack.c.bf16 %v877_v39, %v874_v46 }
 0x1d9   : > { %v889_v57 = vpop.f32.mrf.mxu1 }
 0x1da   : > { %v890_v21 = vadd.f32 %v1666_v19, %v889_v57 }
 0x1db   : > { %v1290_v58 = vpop.f32.mrf.mxu1 }
 0x1dc   : > { %v901_v9 = vadd.f32 %v1290_v58, %v1666_v19 }
 0x1dd   : > { %v892_v59 = vpop.f32.mrf.mxu1 }
 0x1de   : > { %v952_v15 = vpack.c.bf16 %v901_v9, %v898_v27  ;;  %v893_v18 = vadd.f32 %v1666_v19, %v892_v59 }
 0x1df   : > { %v1293_v60 = vpop.f32.mrf.mxu1 }
 0x1e0   : > { %v914_v0 = vadd.f32 %v1293_v60, %v1666_v19  ;;  %v951_v32 = vpack.c.bf16 %v893_v18, %v890_v21 }
 0x1e1   : > { %v905_v61 = vpop.f32.mrf.mxu1 }
 0x1e2   : > { %v906_v4 = vadd.f32 %v1666_v19, %v905_v61 }
 0x1e3   : > { %v1294_v63 = vpop.f32.mrf.mxu1 }
 0x1e4   : > { %v917_v1 = vadd.f32 %v1294_v63, %v1666_v19 }
 0x1e5   : > { %v908_v3 = vpop.f32.mrf.mxu1 }
 0x1e6   : > { %v954_v5 = vpack.c.bf16 %v917_v1, %v914_v0  ;;  %v909_v6 = vadd.f32 %v1666_v19, %v908_v3 }
 0x1e8   : > { %v953_v10 = vpack.c.bf16 %v909_v6, %v906_v4  ;;  %1191 = vmatprep.subr.bf16.mxu0 %v954_v5 }
 0x1e9   : > { %1192 = vmatpush3.bf16.msra.mxu0 %v946_v7 }
 0x1ea   : > { %1193 = vmatprep.subr.bf16.mxu0 %v953_v10 }
 0x1ed   : > { %1194 = vmatpush3.bf16.msra.mxu0 %v945_v14 }
 0x1ee   : > { %1195 = vmatprep.subr.bf16.mxu0 %v952_v15 }
 0x1f1   : > { %1196 = vmatpush3.bf16.msra.mxu0 %v944_v24 }
 0x1f2   : > { %1197 = vmatprep.subr.bf16.mxu0 %v951_v32 }
 0x1f5   : > { %1198 = vmatpush3.bf16.msra.mxu0 %v943_v44 }
 0x1f6   : > { %1199 = vmatprep.subr.bf16.mxu0 %v950_v45 }
 0x1f9   : > { %1200 = vmatpush3.bf16.msra.mxu0 %v942_v37 }
 0x1fa   : > { %1201 = vmatprep.subr.bf16.mxu0 %v949_v43 }
 0x1fd   : > { %1202 = vmatpush3.bf16.msra.mxu0 %v941_v40 }
 0x1fe   : > { %1203 = vmatprep.subr.bf16.mxu0 %v948_v52 }
 0x201   : > { %1204 = vmatpush3.bf16.msra.mxu0 %v940_v26 }
 0x202   : > { %1205 = vmatprep.subr.bf16.mxu0 %v947_v50 }
 0x205   : > { %1206 = vmatpush3.bf16.msra.mxu0 %v939_v30 }
 0x208   : > { %1145 = vmatmul.mubr.msk.bf16.vlgmr.msra.gmra.mxu0 %vm1144_vm4, %v1455_v17 }
 0x2c8   : > { %v1207_v19 = vpop.f32.mrf.mxu0 }
 0x2ca   : > { %v1208_v33 = vpop.f32.mrf.mxu0 }
 0x2cb   : > { %v1209_v22 = vadd.f32 %v1208_v33, %v1207_v19 }
 0x2cc   : > { %v1210_v23 = vpop.f32.mrf.mxu0 }
 0x2cd   : > { %997 = vst [vmem:[%s281_s17] sm:$0xff] %v1209_v22 }
 0x2ce   : > { %v1211_v12 = vpop.f32.mrf.mxu0 }
 0x2cf   : > { %1390 = shalt.err (!%p1387_p6)
}
 0x2d0   : > { %s1391_s12 = scalar_lea.hbm %s1746_s27, 128  ;;  %s1395_s15 = scalar_lea.hbm %s1792_s6, 256 }
 0x2d1   : > { %p1392_p7 = scmp.ne.s32.totalorder %s1746_s27, %s1391_s12  ;;  %p1396_p11 = scmp.lt.s32.totalorder %s1746_s27, %s1792_s6 }
 0x2d2   : > { %p1397_p12 = scmp.lt.s32.totalorder %s1395_s15, %s1391_s12 }
 0x2d3   : > { %p1393_p9 = pnand %p1392_p7, %p1532_p4 }
 0x2d4   : > { %p1398_p13 = por %p1397_p12, %p1396_p11 }
 0x2d5   : > { %p1394_p10 = pneg %p1393_p9 }
 0x2d7   : > { %p1399_p0 = pnand %p1398_p13, %p1394_p10 }
 0x2d9   : > { %1402 = shalt.err (!%p1399_p0)
}
 0x2da   : > { %1295 = dma.vmem_to_hbm [thread:$0]  (%p1532_p4), %s1013_s18, 128, %s1746_s27, %s999_s28  }
 0x2db PF: > { %p1301_p1 = scmp.ge.s32.totalorder %s1453_s26, 2  ;;  %s1024_s19 = sand.u32 1, %s1433_s21  }
 0x2dc   : > { %s1025_s20 = scalar_lea.sflag [#allocation3], %s1024_s19 }
 0x2dd   : > { %p1298_p2 = pnand %p1301_p1, %p1539_p8 }
 0x2df   : > { %p1299_p3 = pneg %p1298_p2 }
 0x2e1   : > { %1428 = dma.done.wait (%p1299_p3), %s1025_s20, 128  }
 0x2e2   : > { %1430 = vsyncadd (%p1299_p3), %s1025_s20, 4294967168  ;;  %s19_s26 = sadd.s32 1, %s1453_s26   ;;  %s1795_s21 = smov %s1437_s22 }
 0x2e3   : > { %p16_p5 = scmp.ge.s32.totalorder %s19_s26, 4   ;;  %s1796_s22 = smov %s1441_s23 }
 0x2e4   : > { %s1797_s23 = smov %s1545_s10  ;;  %s1798_s24 = smov %s1449_s25 }
 0x2e5   : > { %s1799_s25 = smov %s1801_s29  ;;  %18 = sbr.rel (!%p16_p5) target bundleno = 4 (0x4), region = 86 }
 0x2ea   :  { %1030 = vsyncpa [#allocation3], 1 }
 0x2eb   :  { %1032 = vsyncpa [#allocation3 + $0x1], 1 }

</bundles_post_ra>
